<compile_context>
chip_gen: v7x
topology: tpu7x:2x2x1
jax: 0.10.0
libtpu: 0.0.40
codegen_flags: <defaults>
</compile_context>

<pallas_src>
import functools

import jax
import jax.numpy as jnp
from jax.experimental import pallas as pl
from jax.experimental.pallas import tpu as pltpu


def _round_up(x: int, m: int) -> int:
    return (x + m - 1) // m * m


def _default_vmem_budget() -> int:
    cap = None
    try:
        cap = getattr(pltpu.get_tpu_info(), "vmem_capacity_bytes", None)
    except Exception:
        cap = None
    if not cap:
        cap = 64 * 1024 * 1024            # conservative fallback: v7x per-core VMEM
    # ~75% of per-core VMEM, capped at 100 MiB: ~48 MiB on v7x, ~96 MiB on v5e/v6e.
    return int(min(cap * 3 // 4, 100 * 1024 * 1024))


def encoder_kernel(x_ref, w_ref, b_ref, o_ref, acc_ref, *,
                   inv_s, ts, seq_len, mask_seq):
    # Grid = (batch_tiles, seq_tiles); seq is the trailing ("arbitrary") axis.
    si = pl.program_id(1)

    @pl.when(si == 0)
    def _init():
        acc_ref[...] = jnp.zeros_like(acc_ref)

    # Running seq-sum in f32 (VPU adds + small XLU sublane reduce), fully hidden
    # under the src DMA.
    x = x_ref[...].astype(jnp.float32)                      # (TB, TS, H)
    if mask_seq:
        # Ragged last seq tile: zero out-of-range rows before they reach acc.
        seq_idx = jax.lax.broadcasted_iota(jnp.int32, x.shape, 1) + si * ts
        x = jnp.where(seq_idx < seq_len, x, 0.0)
    acc_ref[...] += jnp.sum(x, axis=1)

    @pl.when(si == pl.num_programs(1) - 1)
    def _finalize():
        pooled = (acc_ref[...] * inv_s).astype(jnp.bfloat16)   # 1/S folded in once
        # bf16 MXU operands (W pre-cast in wrapper), f32 accumulation.
        y = jnp.dot(pooled, w_ref[...], preferred_element_type=jnp.float32)
        y = y + b_ref[...]                                     # f32 bias, once
        o_ref[...] = jnp.tanh(y).astype(o_ref.dtype)           # f32 elementwise tail


def encoder_forward(src, w, b, *, tb=None, ts=None, vmem_budget_bytes=None):
    """src: (B, S, H) f32/bf16, w: (H, H), b: (1, H) -> (B, H) f32."""
    B, S, H = src.shape
    assert w.shape == (H, H) and b.shape == (1, H)

    if vmem_budget_bytes is None:
        vmem_budget_bytes = _default_vmem_budget()

    # Lane-dense output width (multiple of 128); src itself is NOT padded.
    Hp = _round_up(H, 128)

    # Batch tile: sublane-aligned; default targets >=2 batch tiles so the
    # "parallel" axis can split across v7x's two TensorCores.
    if tb is None:
        TB = min(128, _round_up(max(1, -(-B // 2)), 8))
    else:
        TB = _round_up(tb, 8)
    TB = min(TB, _round_up(B, 8))

    src_item = jnp.dtype(src.dtype).itemsize
    # Resident / fixed VMEM (conservatively counts the constant blocks as
    # double-buffered; W is bf16 so the duplicate buffer is cheap).
    fixed = (2 * H * Hp * 2        # resident bf16 W
             + 2 * Hp * 4          # resident f32 bias
             + TB * H * 4          # f32 accumulator scratch
             + 2 * TB * Hp * 4)    # double-buffered f32 out tile

    if ts is None:
        avail = max(vmem_budget_bytes - fixed, 2 * TB * 8 * H * src_item)
        TS = max(8, (avail // (2 * TB * H * src_item)) // 8 * 8)
    else:
        TS = _round_up(ts, 8)
    TS = min(TS, _round_up(S, 8))

    grid = (pl.cdiv(B, TB), pl.cdiv(S, TS))
    mask_seq = (S % TS) != 0

    # Only W / b get (cheap) lane padding; W is pre-cast to bf16 here so the
    # kernel streams half the bytes and skips a per-batch-tile VPU cast.
    wp = jnp.pad(w, ((0, 0), (0, Hp - H))).astype(jnp.bfloat16)
    bp = jnp.pad(b, ((0, 0), (0, Hp - H))).astype(jnp.float32)

    cost = pl.CostEstimate(
        flops=B * S * H + 2 * B * H * Hp,
        transcendentals=B * Hp,
        bytes_accessed=(B * S * H * src_item   # streamed src (unpadded)
                        + H * Hp * 2           # bf16 W
                        + Hp * 4               # bias
                        + B * Hp * 4),         # output
    )

    out = pl.pallas_call(
        functools.partial(encoder_kernel, inv_s=1.0 / S, ts=TS, seq_len=S,
                          mask_seq=mask_seq),
        out_shape=jax.ShapeDtypeStruct((B, Hp), jnp.float32),
        grid_spec=pltpu.PrefetchScalarGridSpec(
            num_scalar_prefetch=0,
            grid=grid,
            in_specs=[
                pl.BlockSpec((TB, TS, H), lambda bi, si: (bi, si, 0)),  # streamed src
                pl.BlockSpec((H, Hp), lambda bi, si: (0, 0)),           # resident bf16 W
                pl.BlockSpec((1, Hp), lambda bi, si: (0, 0)),           # resident f32 bias
            ],
            out_specs=pl.BlockSpec((TB, Hp), lambda bi, si: (bi, 0)),
            scratch_shapes=[pltpu.VMEM((TB, H), jnp.float32)],
        ),
        compiler_params=pltpu.CompilerParams(
            dimension_semantics=("parallel", "arbitrary"),
            vmem_limit_bytes=int(vmem_budget_bytes),
        ),
        cost_estimate=cost,
    )(src, wp, bp)

    return out[:, :H]


if __name__ == "__main__":
    # Small text-encoder shapes; S=20 with ts=8 forces 3 seq grid steps AND a
    # ragged last seq tile, so both the accumulate/finalize path and the
    # in-kernel seq mask are exercised.  B=2 exercises the ragged batch tile.
    B, S, H = 2, 20, 32

    key = jax.random.PRNGKey(0)
    k_src, k_w, k_b = jax.random.split(key, 3)

    src = jax.random.normal(k_src, (B, S, H), dtype=jnp.float32)
    w = jax.random.normal(k_w, (H, H), dtype=jnp.float32) * 0.1
    b = jax.random.normal(k_b, (1, H), dtype=jnp.float32) * 0.1

    out = encoder_forward(src, w, b, ts=8)
    jax.block_until_ready(out)

    # Pure-JAX reference of the same representative math (bf16 matmul operands,
    # f32 accumulation, matching the kernel's mixed precision).
    pooled = jnp.mean(src, axis=1)
    ref = jnp.tanh(
        jnp.dot(pooled.astype(jnp.bfloat16), w.astype(jnp.bfloat16),
                preferred_element_type=jnp.float32) + b)

    assert out.shape == (B, H)
    assert jnp.allclose(out, ref, atol=5e-3, rtol=5e-3), \
        float(jnp.max(jnp.abs(out - ref)))

    print("KERNEL_OK")
</pallas_src>

<mosaic_0001>
module attributes {stable_mosaic.version = 11 : i64} {
  func.func @encoder_kernel(%arg0: i32, %arg1: i32, %arg2: memref<8x8x32xf32, #tpu.memory_space<vmem>>, %arg3: memref<32x128xbf16, #tpu.memory_space<vmem>>, %arg4: memref<1x128xf32, #tpu.memory_space<vmem>>, %arg5: memref<8x128xf32, #tpu.memory_space<vmem>>, %arg6: memref<8x32xf32, #tpu.memory_space<vmem>>) attributes {dimension_semantics = [#tpu.dimension_semantics<parallel>, #tpu.dimension_semantics<arbitrary>], iteration_bounds = array<i64: 1, 3>, scalar_prefetch = 0 : i64, scratch_operands = 1 : i64, tpu.core_type = #tpu.core_type<tc>, window_params = [{transform_indices = @transform_0, window_bounds = array<i64: 8, 8, 32>}, {pipeline_mode = #tpu.pipeline_mode<synchronous>, transform_indices = @transform_1, window_bounds = array<i64: 32, 128>}, {pipeline_mode = #tpu.pipeline_mode<synchronous>, transform_indices = @transform_2, window_bounds = array<i64: 1, 128>}, {transform_indices = @transform_3, window_bounds = array<i64: 8, 128>}]} {
    %c0_i32 = arith.constant 0 : i32
    %0 = arith.cmpi eq, %arg1, %c0_i32 : i32
    %1 = arith.extui %0 : i1 to i32
    %c0_i32_0 = arith.constant 0 : i32
    %2 = arith.cmpi ne, %1, %c0_i32_0 : i32
    scf.if %2 {
      %cst_9 = arith.constant 0.000000e+00 : f32
      %19 = vector.broadcast %cst_9 : f32 to vector<8x32xf32>
      %c0_10 = arith.constant 0 : index
      %c0_11 = arith.constant 0 : index
      %20 = vector.load %arg6[%c0_10, %c0_11] : memref<8x32xf32, #tpu.memory_space<vmem>>, vector<8x32xf32>
      tpu.vector_store %arg6[%c0_10, %c0_11], %19 {strides = array<i32>} : memref<8x32xf32, #tpu.memory_space<vmem>>, vector<8x32xf32>,
    } else {
    }
    %c0 = arith.constant 0 : index
    %c0_1 = arith.constant 0 : index
    %c0_2 = arith.constant 0 : index
    %3 = vector.load %arg2[%c0, %c0_1, %c0_2] : memref<8x8x32xf32, #tpu.memory_space<vmem>>, vector<8x8x32xf32>
    %4 = tpu.iota {dimensions = array<i32: 1>} : vector<8x8x32xi32>
    %c8_i32 = arith.constant 8 : i32
    %5 = arith.muli %arg1, %c8_i32 : i32
    %6 = vector.broadcast %5 : i32 to vector<8x8x32xi32>
    %7 = arith.addi %4, %6 : vector<8x8x32xi32>
    %c20_i32 = arith.constant 20 : i32
    %8 = vector.broadcast %c20_i32 : i32 to vector<8x8x32xi32>
    %9 = arith.cmpi slt, %7, %8 : vector<8x8x32xi32>
    %cst = arith.constant 0.000000e+00 : f32
    %10 = vector.broadcast %cst : f32 to vector<8x8x32xf32>
    %11 = arith.select %9, %3, %10 : vector<8x8x32xi1>, vector<8x8x32xf32>
    %c0_3 = arith.constant 0 : index
    %c0_4 = arith.constant 0 : index
    %12 = vector.load %arg6[%c0_3, %c0_4] : memref<8x32xf32, #tpu.memory_space<vmem>>, vector<8x32xf32>
    %cst_5 = arith.constant dense<0.000000e+00> : vector<8x32xf32>
    %13 = vector.multi_reduction <add>, %11, %cst_5 [1] : vector<8x8x32xf32> to vector<8x32xf32>
    %14 = arith.addf %12, %13 : vector<8x32xf32>
    %c0_6 = arith.constant 0 : index
    %c0_7 = arith.constant 0 : index
    %15 = vector.load %arg6[%c0_6, %c0_7] : memref<8x32xf32, #tpu.memory_space<vmem>>, vector<8x32xf32>
    tpu.vector_store %arg6[%c0_6, %c0_7], %14 {strides = array<i32>} : memref<8x32xf32, #tpu.memory_space<vmem>>, vector<8x32xf32>,
    %c2_i32 = arith.constant 2 : i32
    %16 = arith.cmpi eq, %arg1, %c2_i32 : i32
    %17 = arith.extui %16 : i1 to i32
    %c0_i32_8 = arith.constant 0 : i32
    %18 = arith.cmpi ne, %17, %c0_i32_8 : i32
    scf.if %18 {
      %c0_9 = arith.constant 0 : index
      %c0_10 = arith.constant 0 : index
      %19 = vector.load %arg6[%c0_9, %c0_10] : memref<8x32xf32, #tpu.memory_space<vmem>>, vector<8x32xf32>
      %cst_11 = arith.constant 5.000000e-02 : f32
      %20 = vector.broadcast %cst_11 : f32 to vector<8x32xf32>
      %21 = arith.mulf %19, %20 : vector<8x32xf32>
      %22 = arith.truncf %21 : vector<8x32xf32> to vector<8x32xbf16>
      %c0_12 = arith.constant 0 : index
      %c0_13 = arith.constant 0 : index
      %23 = vector.load %arg3[%c0_12, %c0_13] : memref<32x128xbf16, #tpu.memory_space<vmem>>, vector<32x128xbf16>
      %cst_14 = arith.constant dense<0.000000e+00> : vector<8x128xf32>
      %24 = tpu.matmul %22, %23, %cst_14 {dimension_numbers = #tpu.dot_dimension_numbers<[1], [0], [0], [1], [0, 0, 1, 1], [], []>} : vector<8x32xbf16>, vector<32x128xbf16>, vector<8x128xf32> -> vector<8x128xf32>
      %c0_15 = arith.constant 0 : index
      %c0_16 = arith.constant 0 : index
      %25 = vector.load %arg4[%c0_15, %c0_16] : memref<1x128xf32, #tpu.memory_space<vmem>>, vector<1x128xf32>
      %26 = vector.broadcast %25 : vector<1x128xf32> to vector<8x128xf32>
      %27 = arith.addf %24, %26 : vector<8x128xf32>
      %28 = math.tanh %27 : vector<8x128xf32>
      %c0_17 = arith.constant 0 : index
      %c0_18 = arith.constant 0 : index
      %29 = vector.load %arg5[%c0_17, %c0_18] : memref<8x128xf32, #tpu.memory_space<vmem>>, vector<8x128xf32>
      tpu.vector_store %arg5[%c0_17, %c0_18], %28 {strides = array<i32>} : memref<8x128xf32, #tpu.memory_space<vmem>>, vector<8x128xf32>,
    } else {
    }
    return
  }
  func.func @transform_0(%arg0: i32, %arg1: i32) -> (i32, i32, i32) {
    %c0_i32 = arith.constant 0 : i32
    %c0_i32_0 = arith.constant 0 : i32
    return %arg0, %arg1, %c0_i32 : i32, i32, i32
  }
  func.func @transform_1(%arg0: i32, %arg1: i32) -> (i32, i32) {
    %c0_i32 = arith.constant 0 : i32
    %c0_i32_0 = arith.constant 0 : i32
    %c0_i32_1 = arith.constant 0 : i32
    return %c0_i32, %c0_i32_0 : i32, i32
  }
  func.func @transform_2(%arg0: i32, %arg1: i32) -> (i32, i32) {
    %c0_i32 = arith.constant 0 : i32
    %c0_i32_0 = arith.constant 0 : i32
    %c0_i32_1 = arith.constant 0 : i32
    return %c0_i32, %c0_i32_0 : i32, i32
  }
  func.func @transform_3(%arg0: i32, %arg1: i32) -> (i32, i32) {
    %c0_i32 = arith.constant 0 : i32
    %c0_i32_0 = arith.constant 0 : i32
    return %arg0, %c0_i32 : i32, i32
  }
}

</mosaic_0001>

<bundles_post_ra>
// kernel: tpu_custom_call.1
= control target key start
LH: loop header
LB: loop body
LE: loop exit
PB: predicated region body
PF: predicated region fallthrough
CT: control target
= control target key end

     0   :  { %8 = vsyncpa [#allocation5], 0  ;;  %s836_s12 = smov 0   ;;  %s838_s13 = smov 0   ;;  %s938_s0 = inlined_call_operand.vmem [shape: f32[2,20,32], index: 0, kind: input, shape index: {}]   ;;  %s939_s1 = inlined_call_operand.vmem [shape: bf16[32,128], index: 1, kind: input, shape index: {}]   ;;  %s940_s2 = inlined_call_operand.vmem [shape: f32[1,128], index: 2, kind: input, shape index: {}]   ;;  %s941_s3 = inlined_call_operand.hbm [shape: f32[2,128], index: 3, kind: output, shape index: {}]  }
   0x1   :  { %s840_s14 = smov 0   ;;  %s842_s15 = smov 0  }
   0x2   :  { %s844_s16 = smov 0  }
   0x3 LB: > { %s604_s17 = sadd.s32 4294967295, %s804_s16   ;;  %s23_s18 = sadd.s32 1, %s800_s15  ;;  %s804_s16 = sphi %s844_s16, %s14_s16   ;;  %s800_s15 = sphi %s842_s15, %s945_s15   ;;  %s796_s14 = sphi %s840_s14, %s944_s14   ;;  %s792_s13 = sphi %s838_s13, %s943_s13   ;;  %s788_s12 = sphi %s836_s12, %s942_s12  }
   0x4   : > { %p24_p0 = scmp.ge.s32.totalorder %s23_s18, 3  ;;  %p42_p1 = scmp.ne.s32.totalorder %s792_s13, %s788_s12 }
   0x5   : > { %p43_p2 = scmp.eq.s32.totalorder %s804_s16, 0  ;;  %s35_s20 = sadd.s32 1, %s792_s13 }
   0x6   : > { %s947_s18 = smov (%p24_p0, %s23_s18), 0  ;;  %p606_p5 = scmp.ge.s32.totalorder %s804_s16, 3 }
   0x7   : > { %p44_p3 = por %p43_p2, %p42_p1  ;;  %s31_s19 = ssub.s32 %s800_s15, %s947_s18 }
   0x8   : > { %p33_p4 = scmp.eq.s32.totalorder %s31_s19, 0  ;;  %142 = sbr.rel (%p606_p5) target bundleno = 32 (0x20), region = 24 }
   0xa   : > { %s872_s21 = scalar_select %p33_p4, %s792_s13, %s35_s20  }
   0xf   : > { %145 = sbr.rel (!%p44_p3) target bundleno = 32 (0x20), region = 28  ;;  %s147_s22 = sand.u32 (%p44_p3), 1, %s792_s13  }
  0x10   : > { %s608_s23 = sshll.u32 (%p44_p3), %s800_s15, 3  ;;  %s607_s24 = sshll.u32 (%p44_p3), %s147_s22, 6 }
  0x11   : > { %s157_s27 = scalar_lea.vmem (%p44_p3), %s938_s0, %s608_s23   ;;  %s149_s28 = scalar_lea.vmem (%p44_p3), [#allocation3], %s607_s24  }
  0x12   : > { %s806_s29 = smov (%p44_p3), 0  }
  0x16 LB: >> { %v224_v0 = vld [vmem:[%s157_s27] sm:$0xff]  ;;  %v226_v1 = vld [vmem:[%s157_s27 + $0x18] sm:$0xff]  ;;  %s218_s29 = sadd.s32 1, %s808_s29   ;;  %s808_s29 = sphi %s806_s29, %s218_s29  }
  0x17   : >> { %225 = vst [vmem:[%s149_s28] sm:$0xff] %v224_v0  ;;  %227 = vst [vmem:[%s149_s28 + $0x8] sm:$0xff] %v226_v1  ;;  %p217_p6 = scmp.ge.s32.totalorder %s218_s29, 1 }
  0x19   : > { %220 = sbr.rel (!%p217_p6) target bundleno = 22 (0x16), region = 133 }
  0x20 PF: > { %p615_p7 = scmp.ge.s32.totalorder %s804_s16, 1  ;;  %p264_p8 = scmp.lt.s32.totalorder %s804_s16, 4 }
  0x22   : > { %p265_p9 = pnand %p615_p7, %p264_p8 }
  0x23   : > { %s271_s30 = sand.u32 (!%p265_p9), 1, %s788_s12   ;;  %p617_p10 = scmp.ne.s32.totalorder (!%p265_p9), %s796_s14, 0 }
  0x24   : > { %268 = sbr.rel (%p265_p9) target bundleno = 351 (0x15f), region = 80  ;;  %s616_s4 = sshll.u32 (!%p265_p9), %s271_s30, 6 }
  0x25   : > { %s273_s5 = scalar_lea.vmem (!%p265_p9), [#allocation3], %s616_s4 }
  0x2b   : > { %299 = sbr.rel (%p617_p10) target bundleno = 50 (0x32), region = 88  ;;  %vm300_vm0 = vcmask (!%p617_p10), 261120   ;;  %v810_v2 = vmov (!%p617_p10), 0.0  }
  0x2c   : > { %301 = vst.msk [vmem:[#allocation2] sm:$0xff] (!%p617_p10), %vm300_vm0, %v810_v2 }
  0x32 PF: > { %v310_v3 = vlaneseq  ;;  %s618_s6 = sshll.u32 %s796_s14, 3  ;;  %v302_v6 = vld [vmem:[%s273_s5] sm:$0xff]  ;;  %v303_v7 = vld [vmem:[%s273_s5 + $0x8] sm:$0xff]  ;;  %v304_v8 = vld [vmem:[%s273_s5 + $0x10] sm:$0xff]  ;;  %vm325_vm2 = vcmask 261120   ;;  %vm390_vm3 = vcmask 1041409  }
  0x33   : > { %v313_v4 = vstv %s618_s6  ;;  %v305_v9 = vld [vmem:[%s273_s5 + $0x18] sm:$0xff]  ;;  %v306_v10 = vld [vmem:[%s273_s5 + $0x20] sm:$0xff]  ;;  %v307_v12 = vld [vmem:[%s273_s5 + $0x28] sm:$0xff]  ;;  %vm392_vm4 = vcmask 1042434   ;;  %vm394_vm5 = vcmask 1043459   ;;  %vm396_vm6 = vcmask 1044484  }
  0x34   : > { %v311_v5 = vshrl.u32 %v310_v3, 7  ;;  %v308_v13 = vld [vmem:[%s273_s5 + $0x30] sm:$0xff]  ;;  %v309_v14 = vld [vmem:[%s273_s5 + $0x38] sm:$0xff]  ;;  %vm398_vm7 = vcmask 1045509   ;;  %vm400_vm8 = vcmask 1046534   ;;  %vm402_vm9 = vcmask 1047559  }
  0x35   : > { %p619_p11 = scmp.ne.s32.totalorder %s796_s14, 2 }
  0x36   : > { %v314_v11 = vadd.s32 %v313_v4, %v311_v5  ;;  %vm812_vm10 = vmmov (!%p619_p11), 0  }
  0x38   : > { %vm315_vm1 = vcmp.lt.s32.totalorder %v314_v11, 20 }
  0x39   : > { %v316_v15 = vsel %vm315_vm1, %v302_v6, 0.0  ;;  %v317_v16 = vsel %vm315_vm1, %v303_v7, 0.0  ;;  %v318_v17 = vsel %vm315_vm1, %v304_v8, 0.0  ;;  %v319_v18 = vsel %vm315_vm1, %v305_v9, 0.0 }
  0x3a   : > { %v320_v19 = vsel %vm315_vm1, %v306_v10, 0.0  ;;  %v321_v20 = vsel %vm315_vm1, %v307_v12, 0.0  ;;  %v322_v21 = vsel %vm315_vm1, %v308_v13, 0.0  ;;  %v323_v22 = vsel %vm315_vm1, %v309_v14, 0.0 }
  0x3b   : > { %v326_v23 = vsel %vm325_vm2, %v316_v15, 0.0  ;;  %v333_v24 = vsel %vm325_vm2, %v317_v16, 0.0  ;;  %v340_v25 = vsel %vm325_vm2, %v318_v17, 0.0  ;;  %v347_v26 = vsel %vm325_vm2, %v319_v18, 0.0 }
  0x3c   : > { %v327_v27 = vrot.slane %v326_v23, 4  ;;  %v334_v28 = vrot.slane %v333_v24, 4  ;;  %v341_v29 = vrot.slane %v340_v25, 4  ;;  %v348_v30 = vrot.slane %v347_v26, 4 }
  0x3d   : > { %v354_v31 = vsel %vm325_vm2, %v320_v19, 0.0  ;;  %v361_v32 = vsel %vm325_vm2, %v321_v20, 0.0  ;;  %v368_v33 = vsel %vm325_vm2, %v322_v21, 0.0  ;;  %v375_v34 = vsel %vm325_vm2, %v323_v22, 0.0  ;;  %v324_v19 = vld [vmem:[#allocation2] sm:$0xff] }
  0x3e   : > { %v328_v35 = vadd.f32 %v327_v27, %v326_v23  ;;  %v335_v36 = vadd.f32 %v334_v28, %v333_v24  ;;  %v342_v37 = vadd.f32 %v341_v29, %v340_v25  ;;  %v349_v38 = vadd.f32 %v348_v30, %v347_v26  ;;  %v720_v24 = vld [vmem:[%s939_s1] sm:$0xff] (!%p619_p11)   ;;  %v721_v26 = vld [vmem:[%s939_s1 + $0x8] sm:$0xff] (!%p619_p11)  }
  0x3f   : > { %v355_v39 = vrot.slane %v354_v31, 4  ;;  %v362_v40 = vrot.slane %v361_v32, 4  ;;  %v369_v41 = vrot.slane %v368_v33, 4  ;;  %v376_v42 = vrot.slane %v375_v34, 4  ;;  %v620_v30 = vld [vmem:[%s940_s2] ss:$0 sm:$0xff] (!%p619_p11) }
  0x40   : > { %v329_v43 = vrot.slane %v328_v35, 2  ;;  %v336_v44 = vrot.slane %v335_v36, 2  ;;  %v343_v45 = vrot.slane %v342_v37, 2  ;;  %v350_v46 = vrot.slane %v349_v38, 2 }
  0x41   : > { %v356_v47 = vadd.f32 %v355_v39, %v354_v31  ;;  %v363_v48 = vadd.f32 %v362_v40, %v361_v32  ;;  %v370_v49 = vadd.f32 %v369_v41, %v368_v33  ;;  %v377_v50 = vadd.f32 %v376_v42, %v375_v34 }
  0x42   : > { %v330_v51 = vadd.f32 %v329_v43, %v328_v35  ;;  %v337_v52 = vadd.f32 %v336_v44, %v335_v36  ;;  %v344_v53 = vadd.f32 %v343_v45, %v342_v37  ;;  %v351_v54 = vadd.f32 %v350_v46, %v349_v38 }
  0x43   : > { %v357_v55 = vrot.slane %v356_v47, 2  ;;  %v364_v56 = vrot.slane %v363_v48, 2  ;;  %v371_v57 = vrot.slane %v370_v49, 2  ;;  %v378_v58 = vrot.slane %v377_v50, 2 }
  0x44   : > { %v331_v59 = vrot.slane %v330_v51, 1  ;;  %v338_v60 = vrot.slane %v337_v52, 1  ;;  %v345_v61 = vrot.slane %v344_v53, 1  ;;  %v352_v62 = vrot.slane %v351_v54, 1 }
  0x45   : > { %v358_v63 = vadd.f32 %v357_v55, %v356_v47  ;;  %v365_v0 = vadd.f32 %v364_v56, %v363_v48  ;;  %v372_v1 = vadd.f32 %v371_v57, %v370_v49  ;;  %v379_v2 = vadd.f32 %v378_v58, %v377_v50 }
  0x46   : > { %v332_v3 = vadd.f32 %v331_v59, %v330_v51  ;;  %v339_v4 = vadd.f32 %v338_v60, %v337_v52  ;;  %v346_v5 = vadd.f32 %v345_v61, %v344_v53  ;;  %v353_v6 = vadd.f32 %v352_v62, %v351_v54 }
  0x47   : > { %v359_v7 = vrot.slane %v358_v63, 1  ;;  %v366_v8 = vrot.slane %v365_v0, 1  ;;  %v373_v9 = vrot.slane %v372_v1, 1  ;;  %v380_v10 = vrot.slane %v379_v2, 1 }
  0x48   : > { %v391_v11 = vsel %vm390_vm3, %v339_v4, %v332_v3  ;;  %v811_v25 = vmov (!%p619_p11), 0.0  }
  0x49   : > { %v360_v12 = vadd.f32 %v359_v7, %v358_v63  ;;  %v367_v13 = vadd.f32 %v366_v8, %v365_v0  ;;  %v374_v14 = vadd.f32 %v373_v9, %v372_v1  ;;  %v393_v15 = vsel %vm392_vm4, %v346_v5, %v391_v11  ;;  %631 = vmatprep.subr.bf16.mxu0 (!%p619_p11), %v811_v25 }
  0x4a   : > { %v381_v16 = vadd.f32 %v380_v10, %v379_v2  ;;  %v395_v17 = vsel %vm394_vm5, %v353_v6, %v393_v15  ;;  %632 = vmatpush3.bf16.msra.mxu0 (!%p619_p11), %v720_v24  ;;  %635 = vmatprep.mubr.msk.bf16.mxu0 (!%p619_p11), %vm812_vm10, %v811_v25 }
  0x4b   : > { %v397_v18 = vsel %vm396_vm6, %v360_v12, %v395_v17  ;;  %410 = sbr.rel (%p619_p11) target bundleno = 319 (0x13f), region = 92  ;;  %633 = vmatprep.subr.bf16.mxu0 (!%p619_p11), %v811_v25 }
  0x4c   : > { %v399_v20 = vsel %vm398_vm7, %v367_v13, %v397_v18 }
  0x4d   : > { %v401_v21 = vsel %vm400_vm8, %v374_v14, %v399_v20 }
  0x4e   : > { %v403_v22 = vsel %vm402_vm9, %v381_v16, %v401_v21  ;;  %634 = vmatpush3.bf16.msra.mxu0 (!%p619_p11), %v721_v26 }
  0x4f   : > { %v405_v23 = vadd.f32 %v403_v22, %v324_v19 }
  0x51   : > { %406 = vst.msk [vmem:[#allocation2] sm:$0xff] %vm325_vm2, %v405_v23 }
  0x58   : > { %v411_v27 = vld [vmem:[#allocation2] sm:$0xff] }
  0x59   : > { %v412_v28 = vmul.f32 0.05, %v411_v27 }
  0x5b   : > { %v413_v29 = vpack.c.bf16 %v412_v28, %v412_v28 }
  0x5d   : > { %636 = vmatmul.mubr.msk.bf16.vlgmr.msra.gmra.mrb[0].mxu0 %vm325_vm2, %v413_v29 }
 0x130   : > { %v474_v31 = vpop.f32.mrb[0].mxu0 }
 0x131   : > { %v475_v32 = vadd.f32 %v620_v30, %v474_v31  ;;  %v637_v33 = vpop.f32.mrb[1].mxu0 }
 0x132   : > { %v477_v34 = vpop.f32.mrb[2].mxu0 }
 0x133   : > { %722 = vtanh.f32 %v475_v32  ;;  %v638_v35 = vpop.f32.mrb[3].mxu0 }
 0x13d   : > { %v723_v36 = vpop.eup %722 }
 0x13e   : > { %481 = vst [vmem:[#allocation4] sm:$0xff] %v723_v36 }
 0x13f PF: > { %p624_p12 = scmp.ne.s32.totalorder %s604_s17, 2 }
 0x141   : > { %484 = sbr.rel (%p624_p12) target bundleno = 347 (0x15b), region = 96 }
 0x148   : > { %490 = vsyncadd [#allocation5], 96  ;;  %s813_s14 = smov [#allocation4]  }
 0x149   : > { %s495_s19 = sshll.u32 %s813_s14, 4  ;;  %s496_s19 = int_to_ptr.vmem [resolvable:$true] %s495_s19 }
 0x14a   : > { %s724_s20 = scalar_lea.vmem %s496_s19, 32  ;;  %s728_s22 = scalar_lea.vmem %s496_s19, 128 }
 0x14b   : > { %p725_p13 = scmp.ne.s32.totalorder %s496_s19, %s724_s20  ;;  %p729_p0 = scmp.lt.s32.totalorder %s496_s19, %s496_s19 }
 0x14c   : > { %p730_p1 = scmp.lt.s32.totalorder %s728_s22, %s724_s20 }
 0x14e   : > { %p731_p2 = por %p730_p1, %p729_p0 }
 0x150   : > { %p732_p3 = pnand %p731_p2, %p725_p13 }
 0x152   : > { %735 = shalt.err (!%p732_p3)
}
 0x153   : > { %s736_s25 = scalar_lea.hbm %s941_s3, 32 }
 0x154   : > { %p737_p4 = scmp.ne.s32.totalorder %s941_s3, %s736_s25  ;;  %p740_p5 = scmp.lt.u32.totalorder %s736_s25, %s941_s3 }
 0x156   : > { %p742_p6 = pnand %p740_p5, %p737_p4 }
 0x158   : > { %745 = shalt.err (!%p742_p6)
}
 0x159   : > { %s814_s30 = smov 32   ;;  %s815_s4 = smov 2  }
 0x15a   : > { %501 = dma.vmem_to_hbm [thread:$0]  %s496_s19, 32, %s941_s3, [#allocation5], %s814_s30, %s814_s30, %s815_s4  }
 0x15b PF: > { %p641_p7 = scmp.eq.s32.totalorder %s604_s17, 2 }
 0x15d   : > { %783 = dma.done.wait (%p641_p7), [#allocation5], 128  }
 0x15e   : > { %785 = vsyncadd (%p641_p7), [#allocation5], 4294967168 }
 0x15f PF: > { %s14_s16 = sadd.s32 1, %s804_s16   ;;  %s942_s12 = smov %s792_s13 }
 0x160   : > { %p11_p8 = scmp.ge.s32.totalorder %s14_s16, 5   ;;  %s943_s13 = smov %s872_s21 }
 0x161   : > { %s944_s14 = smov %s800_s15  ;;  %s945_s15 = smov %s947_s18 }
 0x162   :  { %13 = sbr.rel (!%p11_p8) target bundleno = 3 (0x3), region = 155 }
 0x169   :  { %511 = vsyncpa [#allocation5], 1 }
 0x16a   :  { %513 = vsyncpa [#allocation5 + $0x1], 1 }

</bundles_post_ra>
